<compile_context>
chip_gen: v5e
topology: v5e:2x2
jax: 0.10.0
libtpu: 0.0.40
codegen_flags: <defaults>
</compile_context>

<pallas_src>
import jax
import jax.numpy as jnp
from jax import lax
from jax.experimental import pallas as pl
from jax.experimental.pallas import tpu as pltpu

_LANE = 128
_SUBLANE = 8


def _round_up(x, m):
    return (x + m - 1) // m * m


def _cdiv(a, b):
    return (a + b - 1) // b


def _vmem_capacity_bytes():
    """Physical VMEM of the current chip; falls back to the v7x (smallest) size."""
    try:
        info = pltpu.get_tpu_info()
        cap = int(getattr(info, "vmem_capacity_bytes", 0))
        if cap > 0:
            return cap
    except Exception:
        pass
    return 64 * 1024 * 1024


def _vmem_footprint(tb, td):
    """VMEM bytes the pipeline needs for one (tb, td) tiling (f32 worst case)."""
    tdp = _round_up(td, _LANE)
    x_bytes = 2 * tb * tdp * 4            # double-buffered x tile
    w_bytes = 2 * _SUBLANE * tdp * 4      # (1, td) sublane-pads to (8, td), 2 bufs
    o_bytes = 2 * tb * _LANE * 4          # (tb, 1) lane-pads to (tb, 128), 2 bufs
    a_bytes = tb * _LANE * 4              # f32 accumulator scratch
    return x_bytes + w_bytes + o_bytes + a_bytes


def _choose_tiles(batch, d, budget):
    """Pick (tb, td, num_d).  `batch` is already >= 8."""
    # Batch-tile cap: <= 1024 rows, never larger than the 8-aligned batch, and
    # when the batch allows it leave >= 2 grid steps (v7x megacore).
    tb_cap = min(1024, (batch // _SUBLANE) * _SUBLANE)
    if batch >= 2 * _SUBLANE:
        half = max(_SUBLANE, (batch // 2) // _SUBLANE * _SUBLANE)
        tb_cap = min(tb_cap, half)
    tb_cap = max(_SUBLANE, tb_cap)

    # Path 1: whole feature dim in a single block.
    tdp = _round_up(d, _LANE)
    w_bytes = 2 * _SUBLANE * tdp * 4
    per_row = 2 * tdp * 4 + 2 * _LANE * 4 + _LANE * 4
    avail = budget - w_bytes
    if avail > 0:
        tb = min(tb_cap, (avail // per_row) // _SUBLANE * _SUBLANE)
        if tb >= _SUBLANE:
            return tb, d, 1

    # Path 2: split D over a reduction grid axis (huge flatten_size).
    tb = max(_SUBLANE, min(tb_cap, 128))
    fixed = 2 * tb * _LANE * 4 + tb * _LANE * 4
    per_lane = 4 * (2 * tb + 2 * _SUBLANE)
    td = max(_LANE, ((budget - fixed) // per_lane) // _LANE * _LANE)
    td = min(td, _round_up(d, _LANE))
    num_d = _cdiv(d, td)
    return tb, td, num_d


def _make_kernel(d_total, td, num_d):
    """Build the kernel body with statically known chunk counts per D block."""
    last_width = d_total - (num_d - 1) * td      # valid lanes in the last D block
    n_main = td // _LANE
    n_last = last_width // _LANE
    rem = last_width - n_last * _LANE

    def kernel(x_ref, w_ref, b_ref, o_ref, acc_ref):
        # x_ref: (TB, TD) VMEM     w_ref: (1, TD) VMEM (resident over batch)
        # b_ref: (1,) SMEM         o_ref: (TB, 1) VMEM
        # acc_ref: (TB, 128) f32 VMEM scratch

        def accum_chunks(n_chunks):
            # Element-wise (VPU) accumulation of 128-lane chunks; no per-chunk
            # cross-lane reduce (keeps v7x off the XLU bottleneck).
            if n_chunks == 0:
                return
            acc = acc_ref[...]
            if n_chunks <= 32:
                for c in range(n_chunks):
                    s = c * _LANE
                    xc = x_ref[:, pl.ds(s, _LANE)].astype(jnp.float32)
                    wc = w_ref[:, pl.ds(s, _LANE)]
                    acc = acc + xc * wc
            else:
                def body(c, a):
                    s = pl.multiple_of(c * _LANE, _LANE)
                    xc = x_ref[:, pl.ds(s, _LANE)].astype(jnp.float32)
                    wc = w_ref[:, pl.ds(s, _LANE)]
                    return a + xc * wc
                acc = lax.fori_loop(0, n_chunks, body, acc, unroll=8)
            acc_ref[...] = acc

        def finalize():
            # One cross-lane reduce per output tile.
            logits = jnp.sum(acc_ref[...], axis=-1, keepdims=True)
            if rem > 0:   # tail lanes (D not a multiple of 128), static width
                s = n_last * _LANE
                xt = x_ref[:, pl.ds(s, rem)].astype(jnp.float32)
                wt = w_ref[:, pl.ds(s, rem)]
                logits = logits + jnp.sum(xt * wt, axis=-1, keepdims=True)
            logits = logits + b_ref[0]                      # scalar bias (SMEM)
            o_ref[...] = jax.nn.sigmoid(logits).astype(o_ref.dtype)

        if num_d == 1:
            acc_ref[...] = jnp.zeros_like(acc_ref)
            accum_chunks(n_last)
            finalize()
        else:
            k = pl.program_id(1)

            @pl.when(k == 0)
            def _init():
                acc_ref[...] = jnp.zeros_like(acc_ref)

            @pl.when(k < num_d - 1)
            def _main():
                accum_chunks(n_main)

            @pl.when(k == num_d - 1)
            def _last():
                accum_chunks(n_last)
                finalize()

    return kernel


def dummy_model_forward(x_nchw, weight, bias):
    """Forward pass equivalent to DummyModel.forward.

    x_nchw : (B, C, H, W) float32 (or bf16)
    weight : (1, D) float32   (nn.Linear.weight layout), D = C*H*W
    bias   : (1,)   float32
    returns: (B, 1) float32
    """
    B = int(x_nchw.shape[0])
    D = 1
    for s in x_nchw.shape[1:]:
        D *= int(s)

    x_flat = x_nchw.reshape(B, D)                     # nn.Flatten (row-major)
    w = weight.reshape(1, D).astype(jnp.float32)      # lane-dense weight
    b = bias.reshape(1).astype(jnp.float32)           # SMEM scalar

    # Only pad when the batch is below the 8-sublane minimum (<= 7 extra rows).
    b_eff = B
    if B < _SUBLANE:
        x_flat = jnp.pad(x_flat, ((0, _SUBLANE - B), (0, 0)))
        b_eff = _SUBLANE

    cap = _vmem_capacity_bytes()
    budget = min(int(cap * 0.65), 96 * 1024 * 1024)   # ~42 MiB v7x, ~83 MiB v5e/v6e
    tb, td, num_d = _choose_tiles(b_eff, D, budget)

    num_b = _cdiv(b_eff, tb)                          # partial last block is masked
    grid = (num_b, num_d)

    footprint = _vmem_footprint(tb, td)
    vmem_limit = min(max(footprint + (8 << 20), 16 << 20), cap - (4 << 20))

    kernel = _make_kernel(d_total=D, td=td, num_d=num_d)

    out = pl.pallas_call(
        kernel,
        out_shape=jax.ShapeDtypeStruct((b_eff, 1), jnp.float32),
        grid=grid,
        in_specs=[
            # x: streamed (tb, td) tile, double-buffered by the Pallas pipeline.
            pl.BlockSpec((tb, td), lambda i, k: (i, k)),
            # weight: constant over the batch axis -> VMEM-resident per D block.
            pl.BlockSpec((1, td), lambda i, k: (0, k)),
            # bias: whole (1,) array on the scalar path.
            pl.BlockSpec(memory_space=pltpu.MemorySpace.SMEM),
        ],
        out_specs=pl.BlockSpec((tb, 1), lambda i, k: (i, 0)),
        scratch_shapes=[pltpu.VMEM((tb, _LANE), jnp.float32)],
        compiler_params=pltpu.CompilerParams(
            dimension_semantics=("parallel", "arbitrary"),
            vmem_limit_bytes=int(vmem_limit)),
    )(x_flat, w, b)

    return out[:B]


def init_params(key, flatten_size):
    """Deterministic init matching nn.Linear(flatten_size, 1) shapes."""
    k_w, k_b = jax.random.split(key)
    bound = 1.0 / jnp.sqrt(jnp.float32(flatten_size))
    weight = jax.random.uniform(
        k_w, (1, flatten_size), jnp.float32, minval=-bound, maxval=bound)
    bias = jax.random.uniform(
        k_b, (1,), jnp.float32, minval=-bound, maxval=bound)
    return weight, bias


if __name__ == "__main__":
    # Small shapes: hyperparams['flatten_size'] is implied to be C*H*W.
    B, C, H, W = 2, 4, 16, 16
    D = C * H * W  # flatten_size = 1024

    key = jax.random.PRNGKey(0)
    k_x, k_p = jax.random.split(key)
    x = jax.random.normal(k_x, (B, C, H, W), dtype=jnp.float32)
    weight, bias = init_params(k_p, D)

    out = dummy_model_forward(x, weight, bias)
    out = jax.block_until_ready(out)

    # Pure-JAX f32 reference (same reduction dtype as the kernel).
    x_flat = x.reshape(B, D)
    logits_ref = jnp.sum(x_flat * weight.reshape(1, D), axis=-1,
                         keepdims=True) + bias
    ref = jax.nn.sigmoid(logits_ref)

    assert out.shape == (B, 1)
    assert jnp.allclose(out, ref, atol=1e-5, rtol=1e-5), "mismatch vs reference"

    print("KERNEL_OK")
</pallas_src>

<mosaic_0001>
module attributes {stable_mosaic.version = 11 : i64} {
  func.func @kernel(%arg0: i32, %arg1: i32, %arg2: memref<8x1024xf32, #tpu.memory_space<vmem>>, %arg3: memref<1x1024xf32, #tpu.memory_space<vmem>>, %arg4: memref<1xf32, #tpu.memory_space<smem>>, %arg5: memref<8x1xf32, #tpu.memory_space<vmem>>, %arg6: memref<8x128xf32, #tpu.memory_space<vmem>>) attributes {dimension_semantics = [#tpu.dimension_semantics<parallel>, #tpu.dimension_semantics<arbitrary>], iteration_bounds = array<i64: 1, 1>, scalar_prefetch = 0 : i64, scratch_operands = 1 : i64, tpu.core_type = #tpu.core_type<tc>, window_params = [{transform_indices = @transform_0, window_bounds = array<i64: 8, 1024>}, {transform_indices = @transform_1, window_bounds = array<i64: 1, 1024>}, {transform_indices = @transform_2, window_bounds = array<i64: 1>}, {transform_indices = @transform_3, window_bounds = array<i64: 8, 1>}]} {
    %cst = arith.constant 0.000000e+00 : f32
    %0 = vector.broadcast %cst : f32 to vector<8x128xf32>
    %c0 = arith.constant 0 : index
    %c0_0 = arith.constant 0 : index
    %1 = vector.load %arg6[%c0, %c0_0] : memref<8x128xf32, #tpu.memory_space<vmem>>, vector<8x128xf32>
    tpu.vector_store %arg6[%c0, %c0_0], %0 {strides = array<i32>} : memref<8x128xf32, #tpu.memory_space<vmem>>, vector<8x128xf32>,
    %c0_1 = arith.constant 0 : index
    %c0_2 = arith.constant 0 : index
    %2 = vector.load %arg6[%c0_1, %c0_2] : memref<8x128xf32, #tpu.memory_space<vmem>>, vector<8x128xf32>
    %c0_3 = arith.constant 0 : index
    %c0_4 = arith.constant 0 : index
    %3 = vector.load %arg2[%c0_3, %c0_4] : memref<8x1024xf32, #tpu.memory_space<vmem>>, vector<8x128xf32>
    %c0_5 = arith.constant 0 : index
    %c0_6 = arith.constant 0 : index
    %4 = vector.load %arg3[%c0_5, %c0_6] : memref<1x1024xf32, #tpu.memory_space<vmem>>, vector<1x128xf32>
    %5 = vector.broadcast %4 : vector<1x128xf32> to vector<8x128xf32>
    %6 = arith.mulf %3, %5 : vector<8x128xf32>
    %7 = arith.addf %2, %6 : vector<8x128xf32>
    %c0_7 = arith.constant 0 : index
    %c128 = arith.constant 128 : index
    %8 = vector.load %arg2[%c0_7, %c128] : memref<8x1024xf32, #tpu.memory_space<vmem>>, vector<8x128xf32>
    %c0_8 = arith.constant 0 : index
    %c128_9 = arith.constant 128 : index
    %9 = vector.load %arg3[%c0_8, %c128_9] : memref<1x1024xf32, #tpu.memory_space<vmem>>, vector<1x128xf32>
    %10 = vector.broadcast %9 : vector<1x128xf32> to vector<8x128xf32>
    %11 = arith.mulf %8, %10 : vector<8x128xf32>
    %12 = arith.addf %7, %11 : vector<8x128xf32>
    %c0_10 = arith.constant 0 : index
    %c256 = arith.constant 256 : index
    %13 = vector.load %arg2[%c0_10, %c256] : memref<8x1024xf32, #tpu.memory_space<vmem>>, vector<8x128xf32>
    %c0_11 = arith.constant 0 : index
    %c256_12 = arith.constant 256 : index
    %14 = vector.load %arg3[%c0_11, %c256_12] : memref<1x1024xf32, #tpu.memory_space<vmem>>, vector<1x128xf32>
    %15 = vector.broadcast %14 : vector<1x128xf32> to vector<8x128xf32>
    %16 = arith.mulf %13, %15 : vector<8x128xf32>
    %17 = arith.addf %12, %16 : vector<8x128xf32>
    %c0_13 = arith.constant 0 : index
    %c384 = arith.constant 384 : index
    %18 = vector.load %arg2[%c0_13, %c384] : memref<8x1024xf32, #tpu.memory_space<vmem>>, vector<8x128xf32>
    %c0_14 = arith.constant 0 : index
    %c384_15 = arith.constant 384 : index
    %19 = vector.load %arg3[%c0_14, %c384_15] : memref<1x1024xf32, #tpu.memory_space<vmem>>, vector<1x128xf32>
    %20 = vector.broadcast %19 : vector<1x128xf32> to vector<8x128xf32>
    %21 = arith.mulf %18, %20 : vector<8x128xf32>
    %22 = arith.addf %17, %21 : vector<8x128xf32>
    %c0_16 = arith.constant 0 : index
    %c512 = arith.constant 512 : index
    %23 = vector.load %arg2[%c0_16, %c512] : memref<8x1024xf32, #tpu.memory_space<vmem>>, vector<8x128xf32>
    %c0_17 = arith.constant 0 : index
    %c512_18 = arith.constant 512 : index
    %24 = vector.load %arg3[%c0_17, %c512_18] : memref<1x1024xf32, #tpu.memory_space<vmem>>, vector<1x128xf32>
    %25 = vector.broadcast %24 : vector<1x128xf32> to vector<8x128xf32>
    %26 = arith.mulf %23, %25 : vector<8x128xf32>
    %27 = arith.addf %22, %26 : vector<8x128xf32>
    %c0_19 = arith.constant 0 : index
    %c640 = arith.constant 640 : index
    %28 = vector.load %arg2[%c0_19, %c640] : memref<8x1024xf32, #tpu.memory_space<vmem>>, vector<8x128xf32>
    %c0_20 = arith.constant 0 : index
    %c640_21 = arith.constant 640 : index
    %29 = vector.load %arg3[%c0_20, %c640_21] : memref<1x1024xf32, #tpu.memory_space<vmem>>, vector<1x128xf32>
    %30 = vector.broadcast %29 : vector<1x128xf32> to vector<8x128xf32>
    %31 = arith.mulf %28, %30 : vector<8x128xf32>
    %32 = arith.addf %27, %31 : vector<8x128xf32>
    %c0_22 = arith.constant 0 : index
    %c768 = arith.constant 768 : index
    %33 = vector.load %arg2[%c0_22, %c768] : memref<8x1024xf32, #tpu.memory_space<vmem>>, vector<8x128xf32>
    %c0_23 = arith.constant 0 : index
    %c768_24 = arith.constant 768 : index
    %34 = vector.load %arg3[%c0_23, %c768_24] : memref<1x1024xf32, #tpu.memory_space<vmem>>, vector<1x128xf32>
    %35 = vector.broadcast %34 : vector<1x128xf32> to vector<8x128xf32>
    %36 = arith.mulf %33, %35 : vector<8x128xf32>
    %37 = arith.addf %32, %36 : vector<8x128xf32>
    %c0_25 = arith.constant 0 : index
    %c896 = arith.constant 896 : index
    %38 = vector.load %arg2[%c0_25, %c896] : memref<8x1024xf32, #tpu.memory_space<vmem>>, vector<8x128xf32>
    %c0_26 = arith.constant 0 : index
    %c896_27 = arith.constant 896 : index
    %39 = vector.load %arg3[%c0_26, %c896_27] : memref<1x1024xf32, #tpu.memory_space<vmem>>, vector<1x128xf32>
    %40 = vector.broadcast %39 : vector<1x128xf32> to vector<8x128xf32>
    %41 = arith.mulf %38, %40 : vector<8x128xf32>
    %42 = arith.addf %37, %41 : vector<8x128xf32>
    %c0_28 = arith.constant 0 : index
    %c0_29 = arith.constant 0 : index
    %43 = vector.load %arg6[%c0_28, %c0_29] : memref<8x128xf32, #tpu.memory_space<vmem>>, vector<8x128xf32>
    tpu.vector_store %arg6[%c0_28, %c0_29], %42 {strides = array<i32>} : memref<8x128xf32, #tpu.memory_space<vmem>>, vector<8x128xf32>,
    %c0_30 = arith.constant 0 : index
    %c0_31 = arith.constant 0 : index
    %44 = vector.load %arg6[%c0_30, %c0_31] : memref<8x128xf32, #tpu.memory_space<vmem>>, vector<8x128xf32>
    %cst_32 = arith.constant dense<0.000000e+00> : vector<8xf32>
    %45 = vector.multi_reduction <add>, %44, %cst_32 [1] : vector<8x128xf32> to vector<8xf32>
    %46 = vector.shape_cast %45 : vector<8xf32> to vector<8x1xf32>
    %c0_33 = arith.constant 0 : index
    %47 = memref.load %arg4[%c0_33] : memref<1xf32, #tpu.memory_space<smem>>
    %48 = vector.broadcast %47 : f32 to vector<8x1xf32>
    %49 = arith.addf %46, %48 : vector<8x1xf32>
    %50 = arith.negf %49 : vector<8x1xf32>
    %51 = math.exp %50 : vector<8x1xf32>
    %cst_34 = arith.constant 1.000000e+00 : f32
    %52 = vector.broadcast %cst_34 : f32 to vector<8x1xf32>
    %53 = arith.addf %52, %51 : vector<8x1xf32>
    %54 = arith.divf %52, %53 : vector<8x1xf32>
    %c0_35 = arith.constant 0 : index
    %c0_36 = arith.constant 0 : index
    %55 = vector.load %arg5[%c0_35, %c0_36] : memref<8x1xf32, #tpu.memory_space<vmem>>, vector<8x1xf32>
    tpu.vector_store %arg5[%c0_35, %c0_36], %54 {strides = array<i32>} : memref<8x1xf32, #tpu.memory_space<vmem>>, vector<8x1xf32>,
    return
  }
  func.func @transform_0(%arg0: i32, %arg1: i32) -> (i32, i32) {
    %c0_i32 = arith.constant 0 : i32
    return %arg0, %arg1 : i32, i32
  }
  func.func @transform_1(%arg0: i32, %arg1: i32) -> (i32, i32) {
    %c0_i32 = arith.constant 0 : i32
    %c0_i32_0 = arith.constant 0 : i32
    return %c0_i32, %arg1 : i32, i32
  }
  func.func @transform_2(%arg0: i32, %arg1: i32) -> i32 {
    %c0_i32 = arith.constant 0 : i32
    %c0_i32_0 = arith.constant 0 : i32
    return %c0_i32 : i32
  }
  func.func @transform_3(%arg0: i32, %arg1: i32) -> (i32, i32) {
    %c0_i32 = arith.constant 0 : i32
    %c0_i32_0 = arith.constant 0 : i32
    return %arg0, %c0_i32 : i32, i32
  }
}

</mosaic_0001>

<bundles_post_ra>
// kernel: tpu_custom_call.1
= control target key start
LH: loop header
LB: loop body
LE: loop exit
PB: predicated region body
PF: predicated region fallthrough
CT: control target
= control target key end

     0   :  { %9 = vsyncpa [#allocation5], 0  ;;  %s236_s0 = inlined_call_operand.hbm [shape: f32[8,1024], index: 0, kind: input, shape index: {}]   ;;  %s237_s1 = inlined_call_operand.hbm [shape: f32[1,1024], index: 1, kind: input, shape index: {}]   ;;  %s238_s2 = inlined_call_operand.<no memory space> [shape: f32[1], index: 2, kind: input, shape index: {}]   ;;  %s239_s3 = inlined_call_operand.vmem [shape: f32[8,1], index: 3, kind: output, shape index: {}]  }
   0x1   :  { %s16_s14 = sshll.u32 %s236_s0, 4  ;;  %s17_s14 = int_to_ptr.hbm [resolvable:$true] %s16_s14 }
   0x2   :  { %10 = vsyncpa [#allocation7], 0  ;;  %s202_s15 = smov [#allocation4]   ;;  %s27_s19 = sshll.u32 %s237_s1, 4  ;;  %s28_s19 = int_to_ptr.hbm [resolvable:$true] %s27_s19 }
   0x3   :  { %s18_s16 = sshll.u32 %s202_s15, 4  ;;  %s203_s20 = smov [#allocation6]   ;;  %s19_s16 = int_to_ptr.vmem [resolvable:$true] %s18_s16 }
   0x4   :  { %21 = dma.hbm_to_vmem [thread:$0]  %s17_s14, 1024, %s19_s16, [#allocation5]  }
   0x5   :  { %s29_s21 = sshll.u32 %s203_s20, 4  ;;  %s30_s21 = int_to_ptr.vmem [resolvable:$true] %s29_s21 }
   0x6   :  { %32 = dma.hbm_to_vmem [thread:$0]  %s28_s19, 128, %s30_s21, [#allocation7]  }
   0x7   :  { %198 = dma.done.wait [#allocation5], 1024  }
   0x8   :  { %199 = vsyncadd [#allocation5], 4294966272 }
   0x9   :  { %200 = dma.done.wait [#allocation7], 128  }
   0xa   :  { %201 = vsyncadd [#allocation7], 4294967168  ;;  %v45_v0 = vld [vmem:[#allocation4] sm:$0xff]  ;;  %v52_v2 = vld [vmem:[#allocation4 + $0x8] sm:$0xff]  ;;  %v106_v31 = vstv %s238_s2  ;;  %vm127_vm3 = vcmask 7168  }
   0xb   :  { %v138_v1 = vld [vmem:[#allocation6] ss:$0 sm:$0xff]  ;;  %v139_v3 = vld [vmem:[#allocation6 + $0x1] ss:$0 sm:$0xff]  ;;  %v59_v5 = vld [vmem:[#allocation4 + $0x10] sm:$0xff] }
   0xc   :  { %v50_v4 = vmul.f32 %v138_v1, %v45_v0  ;;  %v140_v6 = vld [vmem:[#allocation6 + $0x2] ss:$0 sm:$0xff]  ;;  %v57_v7 = vmul.f32 %v139_v3, %v52_v2  ;;  %v66_v8 = vld [vmem:[#allocation4 + $0x18] sm:$0xff]  ;;  %v141_v9 = vld [vmem:[#allocation6 + $0x3] ss:$0 sm:$0xff] }
   0xd   :  { %v64_v10 = vmul.f32 %v140_v6, %v59_v5  ;;  %v73_v11 = vld [vmem:[#allocation4 + $0x20] sm:$0xff]  ;;  %v71_v14 = vmul.f32 %v141_v9, %v66_v8  ;;  %v80_v16 = vld [vmem:[#allocation4 + $0x28] sm:$0xff]  ;;  %v87_v20 = vld [vmem:[#allocation4 + $0x30] sm:$0xff] }
   0xe   :  { %v142_v12 = vld [vmem:[#allocation6 + $0x4] ss:$0 sm:$0xff]  ;;  %v58_v13 = vadd.f32 %v57_v7, %v50_v4  ;;  %v143_v15 = vld [vmem:[#allocation6 + $0x5] ss:$0 sm:$0xff]  ;;  %v144_v19 = vld [vmem:[#allocation6 + $0x6] ss:$0 sm:$0xff] }
   0xf   :  { %v78_v18 = vmul.f32 %v142_v12, %v73_v11  ;;  %v85_v22 = vmul.f32 %v143_v15, %v80_v16  ;;  %v145_v23 = vld [vmem:[#allocation6 + $0x7] ss:$0 sm:$0xff]  ;;  %v94_v24 = vld [vmem:[#allocation4 + $0x38] sm:$0xff]  ;;  %v92_v26 = vmul.f32 %v144_v19, %v87_v20 }
  0x10   :  { %v65_v17 = vadd.f32 %v64_v10, %v58_v13  ;;  %v99_v28 = vmul.f32 %v145_v23, %v94_v24 }
  0x12   :  { %v72_v21 = vadd.f32 %v71_v14, %v65_v17 }
  0x14   :  { %v79_v25 = vadd.f32 %v78_v18, %v72_v21 }
  0x16   :  { %v86_v27 = vadd.f32 %v85_v22, %v79_v25 }
  0x18   :  { %v93_v29 = vadd.f32 %v92_v26, %v86_v27 }
  0x1a   :  { %v100_v30 = vadd.f32 %v99_v28, %v93_v29 }
  0x1c   :  { %103 = vadd.xlane.f32.xlu0 %v100_v30 }
  0x8f   :  { %v104_v32 = vpop.xlane.xlu0 %103 }
  0x90   :  { %v107_v33 = vadd.f32 %v106_v31, %v104_v32 }
  0x92   :  { %v135_v34 = vmul.f32 -1.442695, %v107_v33 }
  0x94   :  { %146 = vpow2.f32 %v135_v34 }
  0x9a   :  { %v147_v35 = vpop.eup %146 }
  0x9b   :  { %v111_v36 = vadd.f32 1.0, %v147_v35 }
  0x9d   :  { %148 = vrcp.f32 %v111_v36  ;;  %v123_v40 = vand.u32 2147483648, %v111_v36  ;;  %v121_v42 = vand.u32 2147483647, %v111_v36  ;;  %vm117_vm1 = vweird.f32 %v111_v36 }
  0x9f   :  { %v124_v44 = vor.u32 1.1754944e-38, %v123_v40  ;;  %vm122_vm4 = vcmp.eq.f32.partialorder %v121_v42, 8.507059e+37 }
  0xa3   :  { %v149_v37 = vpop.eup %148 }
  0xa4   :  { %v113_v38 = vmul.f32 %v149_v37, %v111_v36  ;;  %vm118_vm0 = vweird.f32 %v149_v37 }
  0xa5   :  { %vm119_vm2 = vmor %vm117_vm1, %vm118_vm0 }
  0xa6   :  { %v114_v39 = vsub.f32 1.0, %v113_v38 }
  0xa8   :  { %v115_v41 = vmul.f32 %v149_v37, %v114_v39 }
  0xaa   :  { %v116_v43 = vadd.f32 %v149_v37, %v115_v41 }
  0xac   :  { %v120_v45 = vsel %vm119_vm2, %v149_v37, %v116_v43 }
  0xad   :  { %v125_v46 = vsel %vm122_vm4, %v124_v44, %v120_v45 }
  0xae   :  { %128 = vst.msk [vmem:[%s239_s3] sm:$0xff] %vm127_vm3, %v125_v46 }
  0xaf   :  { %133 = vsyncpa [#allocation5], 1 }
  0xb0   :  { %134 = vsyncpa [#allocation7], 1 }

</bundles_post_ra>
